<compile_context>
chip_gen: v5e
topology: v5e:2x2
jax: 0.10.0
libtpu: 0.0.40
codegen_flags: <defaults>
</compile_context>

<pallas_src>
import jax
import jax.numpy as jnp
from jax.experimental import pallas as pl
from jax.experimental.pallas import tpu as pltpu

SEQ_LEN = 8        # fc1 = Linear(128*2, 512) => (L/2)/2 == 2 => L == 8
MAX_TILE_B = 512   # per-tile working set ~8 MiB; safe on v5e/v6e/v7x w/ 32 MiB limit


def _pick_tile_b(B):
    """Large tile to amortize ~0.35us/grid-step, but keep >=2 grid steps for
    v7x's two TensorCores whenever the batch allows it."""
    if B >= 2 * MAX_TILE_B:
        return MAX_TILE_B
    half = -(-B // 2)                    # ceil(B / 2)
    return max(8, -(-half // 8) * 8)     # round up to a sublane multiple


def phospho_kernel(x_ref, w1_ref, b1_ref, w2_ref, b2_ref,
                   wf1_ref, bf1_ref, wf2_ref, bf2_ref, out_ref):
    Bt = x_ref.shape[0]
    L = x_ref.shape[1] - 2               # input pre-padded (+1 each side) in wrapper
    L1 = L // 2

    xpad = x_ref[...]                    # (Bt, L+2) f32
    w1 = w1_ref[...]                     # (3, 64)  [tap, out_ch]
    b1 = b1_ref[...]                     # (1, 64)

    # ---- conv1 (1->64, k=3, pad=1) + ReLU + maxpool(2,2), fused per pooled
    #      position.  The L+2 single-lane -> 64-lane input broadcasts are
    #      hoisted and reused across taps; the (1,64) weight rows only need a
    #      cheap sublane broadcast inside the multiplies.
    cb = [jnp.broadcast_to(xpad[:, c:c + 1], (Bt, 64)) for c in range(L + 2)]
    w1t = [w1[t:t + 1, :] for t in range(3)]

    zero_blk = jnp.zeros((Bt, 64), jnp.float32)
    blocks = [zero_blk]                  # zero halo block for conv2's left tap
    for j in range(L1):
        he = jnp.maximum(cb[2 * j] * w1t[0] + cb[2 * j + 1] * w1t[1]
                         + cb[2 * j + 2] * w1t[2] + b1, 0.0)
        ho = jnp.maximum(cb[2 * j + 1] * w1t[0] + cb[2 * j + 2] * w1t[1]
                         + cb[2 * j + 3] * w1t[2] + b1, 0.0)
        blocks.append(jnp.maximum(he, ho))       # pooled position j, (Bt, 64)
    blocks.append(zero_blk)                      # zero halo block for right tap
    # pooled positions stacked along sublanes, zero-padded at both ends
    pstack = jnp.concatenate(blocks, axis=0)     # ((L1+2)*Bt, 64)

    # ---- conv2 (64->128, k=3, pad=1): three sublane-shifted views of the
    #      zero-padded stack, ONE lane concatenate, ONE fused K=192 MXU matmul
    #      (w2 taps pre-concatenated in glue: row = tap*64 + in_ch, tap0 = l-1).
    n = L1 * Bt
    a2 = jnp.concatenate([pstack[0:n, :],                  # left tap  (l-1)
                          pstack[Bt:Bt + n, :],            # center    (l)
                          pstack[2 * Bt:2 * Bt + n, :]],   # right tap (l+1)
                         axis=1)                           # (L1*Bt, 192)
    h2 = jnp.dot(a2, w2_ref[...], preferred_element_type=jnp.float32) + b2_ref[...]
    h2 = jnp.maximum(h2, 0.0)                              # (L1*Bt, 128)

    # ---- maxpool(2,2) along L: sublane-block maxes (positions stay stacked)
    q0 = jnp.maximum(h2[0 * Bt:1 * Bt, :], h2[1 * Bt:2 * Bt, :])   # (Bt, 128)
    q1 = jnp.maximum(h2[2 * Bt:3 * Bt, :], h2[3 * Bt:4 * Bt, :])   # (Bt, 128)

    # ---- fc1 + ReLU: two accumulated K=128 matmuls against sublane-aligned
    #      slices of the resident weight (fc1 columns were permuted in glue to
    #      match torch's c*2+l flatten).  Skips the (Bt,256) flatten copy.
    a1 = (jnp.dot(q0, wf1_ref[0:128, :], preferred_element_type=jnp.float32)
          + jnp.dot(q1, wf1_ref[128:256, :], preferred_element_type=jnp.float32)
          + bf1_ref[...])
    a1 = jnp.maximum(a1, 0.0)                              # (Bt, 512)

    # ---- fc2 (zero-padded to 128 output lanes -> lane-dense stores) + sigmoid;
    #      wrapper slices [:, :8].
    logits = (jnp.dot(a1, wf2_ref[...], preferred_element_type=jnp.float32)
              + bf2_ref[...])                              # (Bt, 128)
    out_ref[...] = jax.nn.sigmoid(logits)

    # TODO(synk): self.out = nn.Linear(8, 1) exists in __init__ but is never
    # used in forward(); it is intentionally not implemented.


@jax.jit
def phospho_cnn_forward(x, params):
    """x: (B, SEQ_LEN) f32 (single input channel already squeezed)."""
    B, L = x.shape
    assert L == SEQ_LEN  # fc1 = Linear(128*2, 512) pins the sequence length
    L1 = L // 2

    tile_b = _pick_tile_b(B)
    # conv1 zero padding done once here -> static slices inside the kernel
    xpad = jnp.pad(x, ((0, 0), (1, 1)))
    # pad batch to a multiple of tile_b so the grid tiles it evenly
    Bp = -(-B // tile_b) * tile_b
    if Bp != B:
        xpad = jnp.pad(xpad, ((0, Bp - B), (0, 0)))
    grid = (Bp // tile_b,)

    const_map = lambda i: (0, 0)                 # weights: resident, fetched once
    in_specs = ([pl.BlockSpec((tile_b, L + 2), lambda i: (i, 0))]
                + [pl.BlockSpec(p.shape, const_map) for p in params])
    out_specs = pl.BlockSpec((tile_b, 128), lambda i: (i, 0))

    flops = Bp * (L * 3 * 64 * 2            # conv1 (VPU)
                  + L1 * 192 * 128 * 2      # fused conv2
                  + 256 * 512 * 2           # fc1 (two K=128 halves)
                  + 512 * 128 * 2)          # fc2 (lane-padded)
    w_bytes = sum(int(p.size) * 4 for p in params)
    bytes_accessed = w_bytes + Bp * (L + 2 + 128) * 4

    out = pl.pallas_call(
        phospho_kernel,
        out_shape=jax.ShapeDtypeStruct((Bp, 128), jnp.float32),
        grid=grid,
        in_specs=in_specs,
        out_specs=out_specs,
        compiler_params=pltpu.CompilerParams(
            dimension_semantics=("parallel",),
            vmem_limit_bytes=32 * 1024 * 1024),
        cost_estimate=pl.CostEstimate(
            flops=flops, transcendentals=Bp * 128,
            bytes_accessed=bytes_accessed),
    )(xpad, *params)

    return out[:B, :8]


# ------------------------- parameters (deterministic) -------------------------
def init_torch_params(key):
    """Create parameters in PyTorch's native layouts, deterministically."""
    ks = jax.random.split(key, 8)
    w1 = jax.random.normal(ks[0], (64, 1, 3), jnp.float32) * 0.10    # Conv1d(1,64,3)
    b1 = jax.random.normal(ks[1], (64,), jnp.float32) * 0.10
    w2 = jax.random.normal(ks[2], (128, 64, 3), jnp.float32) * 0.05  # Conv1d(64,128,3)
    b2 = jax.random.normal(ks[3], (128,), jnp.float32) * 0.05
    wf1 = jax.random.normal(ks[4], (512, 256), jnp.float32) * 0.05   # Linear(256,512)
    bf1 = jax.random.normal(ks[5], (512,), jnp.float32) * 0.05
    wf2 = jax.random.normal(ks[6], (8, 512), jnp.float32) * 0.05     # Linear(512,8)
    bf2 = jax.random.normal(ks[7], (8,), jnp.float32) * 0.05
    return (w1, b1, w2, b2, wf1, bf1, wf2, bf2)


def to_kernel_params(tp):
    """Convert PyTorch-layout params to the kernel's channels-last layout."""
    w1, b1, w2, b2, wf1, bf1, wf2, bf2 = tp
    kw1 = jnp.transpose(w1[:, 0, :], (1, 0))                  # (3, 64)  [tap, oc]
    kb1 = b1.reshape(1, 64)
    # fused conv2 weight: row index = tap*64 + in_ch (tap 0 = l-1, 1 = l, 2 = l+1)
    kw2 = jnp.transpose(w2, (2, 1, 0)).reshape(192, 128)      # (192, 128)
    kb2 = b2.reshape(1, 128)
    # torch flatten index = c*2 + l  ->  kernel flatten index = l*128 + c
    kwf1 = jnp.transpose(wf1.reshape(512, 128, 2), (2, 1, 0)).reshape(256, 512)
    kbf1 = bf1.reshape(1, 512)
    # fc2 padded to 128 output lanes (lane-dense stores); wrapper slices [:, :8]
    kwf2 = jnp.pad(jnp.transpose(wf2, (1, 0)), ((0, 0), (0, 120)))   # (512, 128)
    kbf2 = jnp.pad(bf2.reshape(1, 8), ((0, 0), (0, 120)))            # (1, 128)
    return (kw1, kb1, kw2, kb2, kwf1, kbf1, kwf2, kbf2)


# ------------------------- pure-JAX reference (sanity) -------------------------
def ref_forward(x_ncl, tp):
    w1, b1, w2, b2, wf1, bf1, wf2, bf2 = tp
    dn = ("NCH", "OIH", "NCH")
    y = jax.lax.conv_general_dilated(x_ncl, w1, (1,), [(1, 1)], dimension_numbers=dn)
    y = jax.nn.relu(y + b1[None, :, None])
    y = jax.lax.reduce_window(y, -jnp.inf, jax.lax.max, (1, 1, 2), (1, 1, 2), "VALID")
    y = jax.lax.conv_general_dilated(y, w2, (1,), [(1, 1)], dimension_numbers=dn)
    y = jax.nn.relu(y + b2[None, :, None])
    y = jax.lax.reduce_window(y, -jnp.inf, jax.lax.max, (1, 1, 2), (1, 1, 2), "VALID")
    y = y.reshape(y.shape[0], -1)                            # torch NCL flatten (c*2+l)
    y = jax.nn.relu(y @ wf1.T + bf1)
    y = jax.nn.sigmoid(y @ wf2.T + bf2)
    return y


if __name__ == "__main__":
    key = jax.random.PRNGKey(0)
    kx, kp = jax.random.split(key)
    B = 2
    x_ncl = jax.random.normal(kx, (B, 1, SEQ_LEN), jnp.float32)   # PyTorch NCL input
    x = x_ncl[:, 0, :]                                            # kernel layout (B, L)

    torch_params = init_torch_params(kp)
    kernel_params = to_kernel_params(torch_params)

    out = phospho_cnn_forward(x, kernel_params)
    out = jax.block_until_ready(out)
    assert out.shape == (B, 8) and out.dtype == jnp.float32

    ref = ref_forward(x_ncl, torch_params)
    max_err = float(jnp.max(jnp.abs(out - ref)))
    assert max_err < 1e-4, f"mismatch vs reference: {max_err}"

    # Second check: exercises the multi-step grid + batch-padding path
    # (B=20 -> tile_b=16, grid=(2,), 12 padded rows sliced off).
    B2 = 20
    x2_ncl = jax.random.normal(jax.random.PRNGKey(1), (B2, 1, SEQ_LEN), jnp.float32)
    out2 = jax.block_until_ready(phospho_cnn_forward(x2_ncl[:, 0, :], kernel_params))
    assert out2.shape == (B2, 8)
    ref2 = ref_forward(x2_ncl, torch_params)
    max_err2 = float(jnp.max(jnp.abs(out2 - ref2)))
    assert max_err2 < 1e-4, f"mismatch vs reference (multi-tile): {max_err2}"

    print("KERNEL_OK")
</pallas_src>

<mosaic_0001>
module attributes {stable_mosaic.version = 11 : i64} {
  func.func @phospho_kernel(%arg0: i32, %arg1: memref<8x10xf32, #tpu.memory_space<vmem>>, %arg2: memref<3x64xf32, #tpu.memory_space<vmem>>, %arg3: memref<1x64xf32, #tpu.memory_space<vmem>>, %arg4: memref<192x128xf32, #tpu.memory_space<vmem>>, %arg5: memref<1x128xf32, #tpu.memory_space<vmem>>, %arg6: memref<256x512xf32, #tpu.memory_space<vmem>>, %arg7: memref<1x512xf32, #tpu.memory_space<vmem>>, %arg8: memref<512x128xf32, #tpu.memory_space<vmem>>, %arg9: memref<1x128xf32, #tpu.memory_space<vmem>>, %arg10: memref<8x128xf32, #tpu.memory_space<vmem>>) attributes {dimension_semantics = [#tpu.dimension_semantics<parallel>], iteration_bounds = array<i64: 1>, scalar_prefetch = 0 : i64, scratch_operands = 0 : i64, tpu.core_type = #tpu.core_type<tc>, window_params = [{transform_indices = @transform_0, window_bounds = array<i64: 8, 10>}, {pipeline_mode = #tpu.pipeline_mode<synchronous>, transform_indices = @transform_1, window_bounds = array<i64: 3, 64>}, {pipeline_mode = #tpu.pipeline_mode<synchronous>, transform_indices = @transform_2, window_bounds = array<i64: 1, 64>}, {pipeline_mode = #tpu.pipeline_mode<synchronous>, transform_indices = @transform_3, window_bounds = array<i64: 192, 128>}, {pipeline_mode = #tpu.pipeline_mode<synchronous>, transform_indices = @transform_4, window_bounds = array<i64: 1, 128>}, {pipeline_mode = #tpu.pipeline_mode<synchronous>, transform_indices = @transform_5, window_bounds = array<i64: 256, 512>}, {pipeline_mode = #tpu.pipeline_mode<synchronous>, transform_indices = @transform_6, window_bounds = array<i64: 1, 512>}, {pipeline_mode = #tpu.pipeline_mode<synchronous>, transform_indices = @transform_7, window_bounds = array<i64: 512, 128>}, {pipeline_mode = #tpu.pipeline_mode<synchronous>, transform_indices = @transform_8, window_bounds = array<i64: 1, 128>}, {transform_indices = @transform_9, window_bounds = array<i64: 8, 128>}]} {
    %c0 = arith.constant 0 : index
    %c0_0 = arith.constant 0 : index
    %0 = vector.load %arg1[%c0, %c0_0] : memref<8x10xf32, #tpu.memory_space<vmem>>, vector<8x10xf32>
    %c0_1 = arith.constant 0 : index
    %c0_2 = arith.constant 0 : index
    %1 = vector.load %arg2[%c0_1, %c0_2] : memref<3x64xf32, #tpu.memory_space<vmem>>, vector<3x64xf32>
    %c0_3 = arith.constant 0 : index
    %c0_4 = arith.constant 0 : index
    %2 = vector.load %arg3[%c0_3, %c0_4] : memref<1x64xf32, #tpu.memory_space<vmem>>, vector<1x64xf32>
    %3 = vector.extract_strided_slice %0 {offsets = [0, 0], sizes = [8, 1], strides = [1, 1]} : vector<8x10xf32> to vector<8x1xf32>
    %4 = vector.shape_cast %3 : vector<8x1xf32> to vector<8x1xf32>
    %5 = vector.broadcast %4 : vector<8x1xf32> to vector<8x64xf32>
    %6 = vector.extract_strided_slice %0 {offsets = [0, 1], sizes = [8, 1], strides = [1, 1]} : vector<8x10xf32> to vector<8x1xf32>
    %7 = vector.shape_cast %6 : vector<8x1xf32> to vector<8x1xf32>
    %8 = vector.broadcast %7 : vector<8x1xf32> to vector<8x64xf32>
    %9 = vector.extract_strided_slice %0 {offsets = [0, 2], sizes = [8, 1], strides = [1, 1]} : vector<8x10xf32> to vector<8x1xf32>
    %10 = vector.shape_cast %9 : vector<8x1xf32> to vector<8x1xf32>
    %11 = vector.broadcast %10 : vector<8x1xf32> to vector<8x64xf32>
    %12 = vector.extract_strided_slice %0 {offsets = [0, 3], sizes = [8, 1], strides = [1, 1]} : vector<8x10xf32> to vector<8x1xf32>
    %13 = vector.shape_cast %12 : vector<8x1xf32> to vector<8x1xf32>
    %14 = vector.broadcast %13 : vector<8x1xf32> to vector<8x64xf32>
    %15 = vector.extract_strided_slice %0 {offsets = [0, 4], sizes = [8, 1], strides = [1, 1]} : vector<8x10xf32> to vector<8x1xf32>
    %16 = vector.shape_cast %15 : vector<8x1xf32> to vector<8x1xf32>
    %17 = vector.broadcast %16 : vector<8x1xf32> to vector<8x64xf32>
    %18 = vector.extract_strided_slice %0 {offsets = [0, 5], sizes = [8, 1], strides = [1, 1]} : vector<8x10xf32> to vector<8x1xf32>
    %19 = vector.shape_cast %18 : vector<8x1xf32> to vector<8x1xf32>
    %20 = vector.broadcast %19 : vector<8x1xf32> to vector<8x64xf32>
    %21 = vector.extract_strided_slice %0 {offsets = [0, 6], sizes = [8, 1], strides = [1, 1]} : vector<8x10xf32> to vector<8x1xf32>
    %22 = vector.shape_cast %21 : vector<8x1xf32> to vector<8x1xf32>
    %23 = vector.broadcast %22 : vector<8x1xf32> to vector<8x64xf32>
    %24 = vector.extract_strided_slice %0 {offsets = [0, 7], sizes = [8, 1], strides = [1, 1]} : vector<8x10xf32> to vector<8x1xf32>
    %25 = vector.shape_cast %24 : vector<8x1xf32> to vector<8x1xf32>
    %26 = vector.broadcast %25 : vector<8x1xf32> to vector<8x64xf32>
    %27 = vector.extract_strided_slice %0 {offsets = [0, 8], sizes = [8, 1], strides = [1, 1]} : vector<8x10xf32> to vector<8x1xf32>
    %28 = vector.shape_cast %27 : vector<8x1xf32> to vector<8x1xf32>
    %29 = vector.broadcast %28 : vector<8x1xf32> to vector<8x64xf32>
    %30 = vector.extract_strided_slice %0 {offsets = [0, 9], sizes = [8, 1], strides = [1, 1]} : vector<8x10xf32> to vector<8x1xf32>
    %31 = vector.shape_cast %30 : vector<8x1xf32> to vector<8x1xf32>
    %32 = vector.broadcast %31 : vector<8x1xf32> to vector<8x64xf32>
    %33 = vector.extract_strided_slice %1 {offsets = [0, 0], sizes = [1, 64], strides = [1, 1]} : vector<3x64xf32> to vector<1x64xf32>
    %34 = vector.extract_strided_slice %1 {offsets = [1, 0], sizes = [1, 64], strides = [1, 1]} : vector<3x64xf32> to vector<1x64xf32>
    %35 = vector.extract_strided_slice %1 {offsets = [2, 0], sizes = [1, 64], strides = [1, 1]} : vector<3x64xf32> to vector<1x64xf32>
    %cst = arith.constant 0.000000e+00 : f32
    %36 = vector.broadcast %cst : f32 to vector<8x64xf32>
    %37 = vector.broadcast %33 : vector<1x64xf32> to vector<8x64xf32>
    %38 = arith.mulf %5, %37 : vector<8x64xf32>
    %39 = vector.broadcast %34 : vector<1x64xf32> to vector<8x64xf32>
    %40 = arith.mulf %8, %39 : vector<8x64xf32>
    %41 = arith.addf %38, %40 : vector<8x64xf32>
    %42 = vector.broadcast %35 : vector<1x64xf32> to vector<8x64xf32>
    %43 = arith.mulf %11, %42 : vector<8x64xf32>
    %44 = arith.addf %41, %43 : vector<8x64xf32>
    %45 = vector.broadcast %2 : vector<1x64xf32> to vector<8x64xf32>
    %46 = arith.addf %44, %45 : vector<8x64xf32>
    %cst_5 = arith.constant 0.000000e+00 : f32
    %47 = vector.broadcast %cst_5 : f32 to vector<8x64xf32>
    %48 = arith.maximumf %46, %47 : vector<8x64xf32>
    %49 = vector.broadcast %33 : vector<1x64xf32> to vector<8x64xf32>
    %50 = arith.mulf %8, %49 : vector<8x64xf32>
    %51 = vector.broadcast %34 : vector<1x64xf32> to vector<8x64xf32>
    %52 = arith.mulf %11, %51 : vector<8x64xf32>
    %53 = arith.addf %50, %52 : vector<8x64xf32>
    %54 = vector.broadcast %35 : vector<1x64xf32> to vector<8x64xf32>
    %55 = arith.mulf %14, %54 : vector<8x64xf32>
    %56 = arith.addf %53, %55 : vector<8x64xf32>
    %57 = vector.broadcast %2 : vector<1x64xf32> to vector<8x64xf32>
    %58 = arith.addf %56, %57 : vector<8x64xf32>
    %cst_6 = arith.constant 0.000000e+00 : f32
    %59 = vector.broadcast %cst_6 : f32 to vector<8x64xf32>
    %60 = arith.maximumf %58, %59 : vector<8x64xf32>
    %61 = arith.maximumf %48, %60 : vector<8x64xf32>
    %62 = vector.broadcast %33 : vector<1x64xf32> to vector<8x64xf32>
    %63 = arith.mulf %11, %62 : vector<8x64xf32>
    %64 = vector.broadcast %34 : vector<1x64xf32> to vector<8x64xf32>
    %65 = arith.mulf %14, %64 : vector<8x64xf32>
    %66 = arith.addf %63, %65 : vector<8x64xf32>
    %67 = vector.broadcast %35 : vector<1x64xf32> to vector<8x64xf32>
    %68 = arith.mulf %17, %67 : vector<8x64xf32>
    %69 = arith.addf %66, %68 : vector<8x64xf32>
    %70 = vector.broadcast %2 : vector<1x64xf32> to vector<8x64xf32>
    %71 = arith.addf %69, %70 : vector<8x64xf32>
    %cst_7 = arith.constant 0.000000e+00 : f32
    %72 = vector.broadcast %cst_7 : f32 to vector<8x64xf32>
    %73 = arith.maximumf %71, %72 : vector<8x64xf32>
    %74 = vector.broadcast %33 : vector<1x64xf32> to vector<8x64xf32>
    %75 = arith.mulf %14, %74 : vector<8x64xf32>
    %76 = vector.broadcast %34 : vector<1x64xf32> to vector<8x64xf32>
    %77 = arith.mulf %17, %76 : vector<8x64xf32>
    %78 = arith.addf %75, %77 : vector<8x64xf32>
    %79 = vector.broadcast %35 : vector<1x64xf32> to vector<8x64xf32>
    %80 = arith.mulf %20, %79 : vector<8x64xf32>
    %81 = arith.addf %78, %80 : vector<8x64xf32>
    %82 = vector.broadcast %2 : vector<1x64xf32> to vector<8x64xf32>
    %83 = arith.addf %81, %82 : vector<8x64xf32>
    %cst_8 = arith.constant 0.000000e+00 : f32
    %84 = vector.broadcast %cst_8 : f32 to vector<8x64xf32>
    %85 = arith.maximumf %83, %84 : vector<8x64xf32>
    %86 = arith.maximumf %73, %85 : vector<8x64xf32>
    %87 = vector.broadcast %33 : vector<1x64xf32> to vector<8x64xf32>
    %88 = arith.mulf %17, %87 : vector<8x64xf32>
    %89 = vector.broadcast %34 : vector<1x64xf32> to vector<8x64xf32>
    %90 = arith.mulf %20, %89 : vector<8x64xf32>
    %91 = arith.addf %88, %90 : vector<8x64xf32>
    %92 = vector.broadcast %35 : vector<1x64xf32> to vector<8x64xf32>
    %93 = arith.mulf %23, %92 : vector<8x64xf32>
    %94 = arith.addf %91, %93 : vector<8x64xf32>
    %95 = vector.broadcast %2 : vector<1x64xf32> to vector<8x64xf32>
    %96 = arith.addf %94, %95 : vector<8x64xf32>
    %cst_9 = arith.constant 0.000000e+00 : f32
    %97 = vector.broadcast %cst_9 : f32 to vector<8x64xf32>
    %98 = arith.maximumf %96, %97 : vector<8x64xf32>
    %99 = vector.broadcast %33 : vector<1x64xf32> to vector<8x64xf32>
    %100 = arith.mulf %20, %99 : vector<8x64xf32>
    %101 = vector.broadcast %34 : vector<1x64xf32> to vector<8x64xf32>
    %102 = arith.mulf %23, %101 : vector<8x64xf32>
    %103 = arith.addf %100, %102 : vector<8x64xf32>
    %104 = vector.broadcast %35 : vector<1x64xf32> to vector<8x64xf32>
    %105 = arith.mulf %26, %104 : vector<8x64xf32>
    %106 = arith.addf %103, %105 : vector<8x64xf32>
    %107 = vector.broadcast %2 : vector<1x64xf32> to vector<8x64xf32>
    %108 = arith.addf %106, %107 : vector<8x64xf32>
    %cst_10 = arith.constant 0.000000e+00 : f32
    %109 = vector.broadcast %cst_10 : f32 to vector<8x64xf32>
    %110 = arith.maximumf %108, %109 : vector<8x64xf32>
    %111 = arith.maximumf %98, %110 : vector<8x64xf32>
    %112 = vector.broadcast %33 : vector<1x64xf32> to vector<8x64xf32>
    %113 = arith.mulf %23, %112 : vector<8x64xf32>
    %114 = vector.broadcast %34 : vector<1x64xf32> to vector<8x64xf32>
    %115 = arith.mulf %26, %114 : vector<8x64xf32>
    %116 = arith.addf %113, %115 : vector<8x64xf32>
    %117 = vector.broadcast %35 : vector<1x64xf32> to vector<8x64xf32>
    %118 = arith.mulf %29, %117 : vector<8x64xf32>
    %119 = arith.addf %116, %118 : vector<8x64xf32>
    %120 = vector.broadcast %2 : vector<1x64xf32> to vector<8x64xf32>
    %121 = arith.addf %119, %120 : vector<8x64xf32>
    %cst_11 = arith.constant 0.000000e+00 : f32
    %122 = vector.broadcast %cst_11 : f32 to vector<8x64xf32>
    %123 = arith.maximumf %121, %122 : vector<8x64xf32>
    %124 = vector.broadcast %33 : vector<1x64xf32> to vector<8x64xf32>
    %125 = arith.mulf %26, %124 : vector<8x64xf32>
    %126 = vector.broadcast %34 : vector<1x64xf32> to vector<8x64xf32>
    %127 = arith.mulf %29, %126 : vector<8x64xf32>
    %128 = arith.addf %125, %127 : vector<8x64xf32>
    %129 = vector.broadcast %35 : vector<1x64xf32> to vector<8x64xf32>
    %130 = arith.mulf %32, %129 : vector<8x64xf32>
    %131 = arith.addf %128, %130 : vector<8x64xf32>
    %132 = vector.broadcast %2 : vector<1x64xf32> to vector<8x64xf32>
    %133 = arith.addf %131, %132 : vector<8x64xf32>
    %cst_12 = arith.constant 0.000000e+00 : f32
    %134 = vector.broadcast %cst_12 : f32 to vector<8x64xf32>
    %135 = arith.maximumf %133, %134 : vector<8x64xf32>
    %136 = arith.maximumf %123, %135 : vector<8x64xf32>
    %137 = tpu.concatenate %36, %61, %86, %111, %136, %36 in 0 : vector<8x64xf32>, vector<8x64xf32>, vector<8x64xf32>, vector<8x64xf32>, vector<8x64xf32>, vector<8x64xf32> -> vector<48x64xf32>
    %138 = vector.extract_strided_slice %137 {offsets = [0, 0], sizes = [32, 64], strides = [1, 1]} : vector<48x64xf32> to vector<32x64xf32>
    %139 = vector.extract_strided_slice %137 {offsets = [8, 0], sizes = [32, 64], strides = [1, 1]} : vector<48x64xf32> to vector<32x64xf32>
    %140 = vector.extract_strided_slice %137 {offsets = [16, 0], sizes = [32, 64], strides = [1, 1]} : vector<48x64xf32> to vector<32x64xf32>
    %141 = tpu.concatenate %138, %139, %140 in 1 : vector<32x64xf32>, vector<32x64xf32>, vector<32x64xf32> -> vector<32x192xf32>
    %c0_13 = arith.constant 0 : index
    %c0_14 = arith.constant 0 : index
    %142 = vector.load %arg4[%c0_13, %c0_14] : memref<192x128xf32, #tpu.memory_space<vmem>>, vector<192x128xf32>
    %cst_15 = arith.constant dense<0.000000e+00> : vector<32x128xf32>
    %143 = tpu.matmul %141, %142, %cst_15 {dimension_numbers = #tpu.dot_dimension_numbers<[1], [0], [0], [1], [0, 0, 1, 1], [], []>} : vector<32x192xf32>, vector<192x128xf32>, vector<32x128xf32> -> vector<32x128xf32>
    %c0_16 = arith.constant 0 : index
    %c0_17 = arith.constant 0 : index
    %144 = vector.load %arg5[%c0_16, %c0_17] : memref<1x128xf32, #tpu.memory_space<vmem>>, vector<1x128xf32>
    %145 = vector.broadcast %144 : vector<1x128xf32> to vector<32x128xf32>
    %146 = arith.addf %143, %145 : vector<32x128xf32>
    %cst_18 = arith.constant 0.000000e+00 : f32
    %147 = vector.broadcast %cst_18 : f32 to vector<32x128xf32>
    %148 = arith.maximumf %146, %147 : vector<32x128xf32>
    %149 = vector.extract_strided_slice %148 {offsets = [0, 0], sizes = [8, 128], strides = [1, 1]} : vector<32x128xf32> to vector<8x128xf32>
    %150 = vector.extract_strided_slice %148 {offsets = [8, 0], sizes = [8, 128], strides = [1, 1]} : vector<32x128xf32> to vector<8x128xf32>
    %151 = arith.maximumf %149, %150 : vector<8x128xf32>
    %152 = vector.extract_strided_slice %148 {offsets = [16, 0], sizes = [8, 128], strides = [1, 1]} : vector<32x128xf32> to vector<8x128xf32>
    %153 = vector.extract_strided_slice %148 {offsets = [24, 0], sizes = [8, 128], strides = [1, 1]} : vector<32x128xf32> to vector<8x128xf32>
    %154 = arith.maximumf %152, %153 : vector<8x128xf32>
    %c0_19 = arith.constant 0 : index
    %c0_20 = arith.constant 0 : index
    %155 = vector.load %arg6[%c0_19, %c0_20] : memref<256x512xf32, #tpu.memory_space<vmem>>, vector<128x512xf32>
    %cst_21 = arith.constant dense<0.000000e+00> : vector<8x512xf32>
    %156 = tpu.matmul %151, %155, %cst_21 {dimension_numbers = #tpu.dot_dimension_numbers<[1], [0], [0], [1], [0, 0, 1, 1], [], []>} : vector<8x128xf32>, vector<128x512xf32>, vector<8x512xf32> -> vector<8x512xf32>
    %c128 = arith.constant 128 : index
    %c0_22 = arith.constant 0 : index
    %157 = vector.load %arg6[%c128, %c0_22] : memref<256x512xf32, #tpu.memory_space<vmem>>, vector<128x512xf32>
    %cst_23 = arith.constant dense<0.000000e+00> : vector<8x512xf32>
    %158 = tpu.matmul %154, %157, %cst_23 {dimension_numbers = #tpu.dot_dimension_numbers<[1], [0], [0], [1], [0, 0, 1, 1], [], []>} : vector<8x128xf32>, vector<128x512xf32>, vector<8x512xf32> -> vector<8x512xf32>
    %159 = arith.addf %156, %158 : vector<8x512xf32>
    %c0_24 = arith.constant 0 : index
    %c0_25 = arith.constant 0 : index
    %160 = vector.load %arg7[%c0_24, %c0_25] : memref<1x512xf32, #tpu.memory_space<vmem>>, vector<1x512xf32>
    %161 = vector.broadcast %160 : vector<1x512xf32> to vector<8x512xf32>
    %162 = arith.addf %159, %161 : vector<8x512xf32>
    %cst_26 = arith.constant 0.000000e+00 : f32
    %163 = vector.broadcast %cst_26 : f32 to vector<8x512xf32>
    %164 = arith.maximumf %162, %163 : vector<8x512xf32>
    %c0_27 = arith.constant 0 : index
    %c0_28 = arith.constant 0 : index
    %165 = vector.load %arg8[%c0_27, %c0_28] : memref<512x128xf32, #tpu.memory_space<vmem>>, vector<512x128xf32>
    %cst_29 = arith.constant dense<0.000000e+00> : vector<8x128xf32>
    %166 = tpu.matmul %164, %165, %cst_29 {dimension_numbers = #tpu.dot_dimension_numbers<[1], [0], [0], [1], [0, 0, 1, 1], [], []>} : vector<8x512xf32>, vector<512x128xf32>, vector<8x128xf32> -> vector<8x128xf32>
    %c0_30 = arith.constant 0 : index
    %c0_31 = arith.constant 0 : index
    %167 = vector.load %arg9[%c0_30, %c0_31] : memref<1x128xf32, #tpu.memory_space<vmem>>, vector<1x128xf32>
    %168 = vector.broadcast %167 : vector<1x128xf32> to vector<8x128xf32>
    %169 = arith.addf %166, %168 : vector<8x128xf32>
    %170 = arith.negf %169 : vector<8x128xf32>
    %171 = math.exp %170 : vector<8x128xf32>
    %cst_32 = arith.constant 1.000000e+00 : f32
    %172 = vector.broadcast %cst_32 : f32 to vector<8x128xf32>
    %173 = arith.addf %172, %171 : vector<8x128xf32>
    %174 = arith.divf %172, %173 : vector<8x128xf32>
    %c0_33 = arith.constant 0 : index
    %c0_34 = arith.constant 0 : index
    %175 = vector.load %arg10[%c0_33, %c0_34] : memref<8x128xf32, #tpu.memory_space<vmem>>, vector<8x128xf32>
    tpu.vector_store %arg10[%c0_33, %c0_34], %174 {strides = array<i32>} : memref<8x128xf32, #tpu.memory_space<vmem>>, vector<8x128xf32>,
    return
  }
  func.func @transform_0(%arg0: i32) -> (i32, i32) {
    %c0_i32 = arith.constant 0 : i32
    %c0_i32_0 = arith.constant 0 : i32
    return %arg0, %c0_i32 : i32, i32
  }
  func.func @transform_1(%arg0: i32) -> (i32, i32) {
    %c0_i32 = arith.constant 0 : i32
    %c0_i32_0 = arith.constant 0 : i32
    %c0_i32_1 = arith.constant 0 : i32
    return %c0_i32, %c0_i32_0 : i32, i32
  }
  func.func @transform_2(%arg0: i32) -> (i32, i32) {
    %c0_i32 = arith.constant 0 : i32
    %c0_i32_0 = arith.constant 0 : i32
    %c0_i32_1 = arith.constant 0 : i32
    return %c0_i32, %c0_i32_0 : i32, i32
  }
  func.func @transform_3(%arg0: i32) -> (i32, i32) {
    %c0_i32 = arith.constant 0 : i32
    %c0_i32_0 = arith.constant 0 : i32
    %c0_i32_1 = arith.constant 0 : i32
    return %c0_i32, %c0_i32_0 : i32, i32
  }
  func.func @transform_4(%arg0: i32) -> (i32, i32) {
    %c0_i32 = arith.constant 0 : i32
    %c0_i32_0 = arith.constant 0 : i32
    %c0_i32_1 = arith.constant 0 : i32
    return %c0_i32, %c0_i32_0 : i32, i32
  }
  func.func @transform_5(%arg0: i32) -> (i32, i32) {
    %c0_i32 = arith.constant 0 : i32
    %c0_i32_0 = arith.constant 0 : i32
    %c0_i32_1 = arith.constant 0 : i32
    return %c0_i32, %c0_i32_0 : i32, i32
  }
  func.func @transform_6(%arg0: i32) -> (i32, i32) {
    %c0_i32 = arith.constant 0 : i32
    %c0_i32_0 = arith.constant 0 : i32
    %c0_i32_1 = arith.constant 0 : i32
    return %c0_i32, %c0_i32_0 : i32, i32
  }
  func.func @transform_7(%arg0: i32) -> (i32, i32) {
    %c0_i32 = arith.constant 0 : i32
    %c0_i32_0 = arith.constant 0 : i32
    %c0_i32_1 = arith.constant 0 : i32
    return %c0_i32, %c0_i32_0 : i32, i32
  }
  func.func @transform_8(%arg0: i32) -> (i32, i32) {
    %c0_i32 = arith.constant 0 : i32
    %c0_i32_0 = arith.constant 0 : i32
    %c0_i32_1 = arith.constant 0 : i32
    return %c0_i32, %c0_i32_0 : i32, i32
  }
  func.func @transform_9(%arg0: i32) -> (i32, i32) {
    %c0_i32 = arith.constant 0 : i32
    %c0_i32_0 = arith.constant 0 : i32
    return %arg0, %c0_i32 : i32, i32
  }
}

</mosaic_0001>

<bundles_post_ra>
// kernel: phospho_cnn_forward.1
= control target key start
LH: loop header
LB: loop body
LE: loop exit
PB: predicated region body
PF: predicated region fallthrough
CT: control target
= control target key end

     0   :  { %14 = vsyncpa [#allocation3], 0  ;;  %s1068_s0 = inlined_call_operand.vmem [shape: f32[8,10], index: 0, kind: input, shape index: {}]   ;;  %s1069_s1 = inlined_call_operand.vmem [shape: f32[3,64], index: 1, kind: input, shape index: {}]   ;;  %s1070_s2 = inlined_call_operand.vmem [shape: f32[1,64], index: 2, kind: input, shape index: {}]   ;;  %s1071_s3 = inlined_call_operand.hbm [shape: f32[192,128], index: 3, kind: input, shape index: {}]   ;;  %s1072_s4 = inlined_call_operand.vmem [shape: f32[1,128], index: 4, kind: input, shape index: {}]   ;;  %s1073_s5 = inlined_call_operand.hbm [shape: f32[256,512], index: 5, kind: input, shape index: {}]   ;;  %s1074_s6 = inlined_call_operand.vmem [shape: f32[1,512], index: 6, kind: input, shape index: {}]   ;;  %s1075_s7 = inlined_call_operand.hbm [shape: f32[512,128], index: 7, kind: input, shape index: {}]   ;;  %s1076_s8 = inlined_call_operand.vmem [shape: f32[1,128], index: 8, kind: input, shape index: {}]   ;;  %s1077_s9 = inlined_call_operand.vmem [shape: f32[8,128], index: 9, kind: output, shape index: {}]  }
   0x1   :  { %15 = vsyncpa [#allocation5], 0  ;;  %s41_s11 = sshll.u32 %s1073_s5, 4  ;;  %s910_s12 = smov [#allocation4]   ;;  %s42_s11 = int_to_ptr.hbm [resolvable:$true] %s41_s11 }
   0x2   :  { %s43_s13 = sshll.u32 %s910_s12, 4  ;;  %s26_s16 = sshll.u32 %s1071_s3, 4  ;;  %s44_s13 = int_to_ptr.vmem [resolvable:$true] %s43_s13  ;;  %s27_s16 = int_to_ptr.hbm [resolvable:$true] %s26_s16 }
   0x3   :  { %s911_s17 = smov 512   ;;  %s912_s18 = smov 32  }
   0x4   :  { %49 = dma.hbm_to_vmem [thread:$0]  %s42_s11, 16384, %s44_s13, [#allocation5], %s911_s17, %s911_s17, %s912_s18  }
   0x5   :  { %s913_s19 = smov [#allocation2]   ;;  %s914_s21 = smov 128  }
   0x6   :  { %s28_s20 = sshll.u32 %s913_s19, 4  ;;  %s915_s22 = smov 8   ;;  %s29_s20 = int_to_ptr.vmem [resolvable:$true] %s28_s20 }
   0x7   :  { %34 = dma.hbm_to_vmem [thread:$0]  %s27_s16, 3072, %s29_s20, [#allocation3], %s914_s21, %s914_s21, %s915_s22  }
   0x8   :  { %s56_s24 = sshll.u32 %s1075_s7, 4  ;;  %s916_s25 = smov [#allocation6]   ;;  %s57_s24 = int_to_ptr.hbm [resolvable:$true] %s56_s24 }
   0x9   :  { %s58_s26 = sshll.u32 %s916_s25, 4  ;;  %s59_s26 = int_to_ptr.vmem [resolvable:$true] %s58_s26 }
   0xa   :  { %64 = dma.hbm_to_vmem [thread:$0]  %s57_s24, 8192, %s59_s26, [#allocation5], %s914_s21, %s914_s21, %s915_s22  }
   0xb   :  { %906 = dma.done.wait [#allocation3], 3072  }
   0xc   :  { %907 = vsyncadd [#allocation3], 4294964224 }
   0xd   :  { %908 = dma.done.wait [#allocation5], 24576  }
   0xe   :  { %909 = vsyncadd [#allocation5], 4294942720  ;;  %v917_v0 = vmov 2   ;;  %v918_v1 = vmov 0   ;;  %v919_v2 = vmov 4   ;;  %v79_v3 = vld [vmem:[%s1068_s0] sm:$0xff] }
   0xf   :  { %818 = vset.pattern.permute.xlu1 %v917_v0  ;;  %816 = vset.pattern.permute.xlu0 %v918_v1  ;;  %v920_v4 = vmov 3   ;;  %v921_v5 = vmov 1   ;;  %v922_v6 = vmov 5   ;;  %v923_v7 = vmov 6   ;;  %v233_v11 = vld [vmem:[#allocation2 + $0xb8] sm:$0xff]  ;;  %v232_v12 = vld [vmem:[#allocation2 + $0xb0] sm:$0xff] }
  0x10   :  { %820 = vset.pattern.permute.xlu2 %v919_v2  ;;  %92 = vperm.xlu1 %818, %v79_v3   ;;  %v924_v8 = vmov 8   ;;  %v925_v9 = vmov 7   ;;  %v926_v10 = vmov 9   ;;  %v231_v13 = vld [vmem:[#allocation2 + $0xa8] sm:$0xff]  ;;  %v230_v14 = vld [vmem:[#allocation2 + $0xa0] sm:$0xff]  ;;  %v229_v15 = vld [vmem:[#allocation2 + $0x98] sm:$0xff] }
  0x11   :  { %84 = vperm.xlu0 %816, %v79_v3   ;;  %100 = vperm.xlu2 %820, %v79_v3   ;;  %v228_v16 = vld [vmem:[#allocation2 + $0x90] sm:$0xff]  ;;  %v227_v17 = vld [vmem:[#allocation2 + $0x88] sm:$0xff]  ;;  %v226_v18 = vld [vmem:[#allocation2 + $0x80] sm:$0xff]  ;;  %vm205_vm0 = vcmask 523264  }
  0x12   :  { %284 = vmatpush.msra.mxu1 %v233_v11  ;;  %v80_v22 = vld [vmem:[%s1069_s1] sm:$0x7]  ;;  %v225_v27 = vld [vmem:[#allocation2 + $0x78] sm:$0xff]  ;;  %v224_v28 = vld [vmem:[#allocation2 + $0x70] sm:$0xff] }
  0x13   :  { %v994_v23 = vperm.slane %v80_v22, 0  ;;  %v996_v24 = vperm.slane %v80_v22, 1  ;;  %v998_v25 = vperm.slane %v80_v22, 2  ;;  %247 = vmatpush.msra.mxu0 %v225_v27  ;;  %v223_v34 = vld [vmem:[#allocation2 + $0x68] sm:$0xff]  ;;  %v222_v42 = vld [vmem:[#allocation2 + $0x60] sm:$0xff]  ;;  %v221_v52 = vld [vmem:[#allocation2 + $0x58] sm:$0xff] }
  0x14   :  { %285 = vmatpush.msra.mxu1 %v232_v12  ;;  %v1014_v47 = vld [vmem:[%s1070_s2] ss:$0 sm:$0xff]  ;;  %v220_v58 = vld [vmem:[#allocation2 + $0x50] sm:$0xff]  ;;  %v219_v1 = vld [vmem:[#allocation2 + $0x48] sm:$0xff]  ;;  %s927_s2 = smov 64  }
  0x15   :  { %248 = vmatpush.msra.mxu0 %v224_v28  ;;  %v217_v22 = vld [vmem:[#allocation2 + $0x38] sm:$0xff]  ;;  %vm791_vm1 = vmneg %vm205_vm0 }
  0x16   :  { %286 = vmatpush.msra.mxu1 %v231_v13 }
  0x17   :  { %249 = vmatpush.msra.mxu0 %v223_v34 }
  0x18   :  { %819 = vset.pattern.permute.xlu1 %v920_v4  ;;  %287 = vmatpush.msra.mxu1 %v230_v14  ;;  %v218_v14 = vld [vmem:[#allocation2 + $0x40] sm:$0xff] }
  0x19   :  { %817 = vset.pattern.permute.xlu0 %v921_v5  ;;  %96 = vperm.xlu1 %819, %v79_v3  }
  0x1a   :  { %88 = vperm.xlu0 %817, %v79_v3   ;;  %821 = vset.pattern.permute.xlu2 %v922_v6 }
  0x1b   :  { %104 = vperm.xlu2 %821, %v79_v3   ;;  %288 = vmatpush.msra.mxu1 %v229_v15 }
  0x1c   :  { %250 = vmatpush.msra.mxu0 %v222_v42 }
  0x1d   :  { %289 = vmatpush.msra.mxu1 %v228_v16 }
  0x1e   :  { %251 = vmatpush.msra.mxu0 %v221_v52  ;;  %v431_v52 = vld [vmem:[#allocation4 + $0x3c0] sm:$0xff] }
  0x1f   :  { %290 = vmatpush.msra.mxu1 %v227_v17 }
  0x20   :  { %252 = vmatpush.msra.mxu0 %v220_v58 }
  0x21   :  { %822 = vset.pattern.permute.xlu1 %v923_v7  ;;  %291 = vmatpush.msra.mxu1 %v226_v18 }
  0x22   :  { %824 = vset.pattern.permute.xlu0 %v924_v8  ;;  %108 = vperm.xlu1 %822, %v79_v3  }
  0x23   :  { %116 = vperm.xlu0 %824, %v79_v3   ;;  %823 = vset.pattern.permute.xlu2 %v925_v9 }
  0x24   :  { %112 = vperm.xlu2 %823, %v79_v3   ;;  %253 = vmatpush.msra.mxu0 %v219_v1  ;;  %v430_v1 = vld [vmem:[#allocation4 + $0x3b8] sm:$0xff] }
  0x26   :  { %254 = vmatpush.msra.mxu0 %v218_v14  ;;  %v411_v14 = vld [vmem:[#allocation4 + $0x320] sm:$0xff] }
  0x28   :  { %255 = vmatpush.msra.mxu0 %v217_v22  ;;  %v403_v22 = vld [vmem:[#allocation4 + $0x2e0] sm:$0xff] }
  0x2a   :  { %825 = vset.pattern.permute.xlu1 %v926_v10 }
  0x2b   :  { %826 = vset.pattern.permute.xlu0 %v926_v10  ;;  %120 = vperm.xlu1 %825, %v79_v3  }
  0x6b   :  { %v101_v19 = vpop.permute.xlu2 %100 }
  0x6c   :  { %v152_v29 = vmul.f32 %v996_v24, %v101_v19  ;;  %v147_v39 = vmul.f32 %v998_v25, %v101_v19  ;;  %v159_v48 = vmul.f32 %v994_v23, %v101_v19 }
  0x75   :  { %v105_v26 = vpop.permute.xlu2 %104 }
  0x76   :  { %v154_v31 = vmul.f32 %v998_v25, %v105_v26  ;;  %v160_v49 = vmul.f32 %v996_v24, %v105_v26  ;;  %v166_v63 = vmul.f32 %v994_v23, %v105_v26 }
  0x78   :  { %v161_v62 = vadd.f32 %v160_v49, %v159_v48  ;;  %v435_v48 = vld [vmem:[#allocation4 + $0x3e0] sm:$0xff]  ;;  %v436_v49 = vld [vmem:[#allocation4 + $0x3e8] sm:$0xff] }
  0x79   :  { %439 = vmatpush.msra.mxu2 %v435_v48  ;;  %459 = vmatpush.msra.mxu3 %v436_v49  ;;  %v381_v48 = vld [vmem:[#allocation4 + $0x230] sm:$0xff]  ;;  %v382_v49 = vld [vmem:[#allocation4 + $0x238] sm:$0xff] }
  0x7b   :  { %440 = vmatpush.msra.mxu2 %v431_v52  ;;  %v377_v52 = vld [vmem:[#allocation4 + $0x210] sm:$0xff] }
  0x7e   :  { %v113_v57 = vpop.permute.xlu2 %112 }
  0x7f   :  { %v175_v2 = vmul.f32 %v996_v24, %v113_v57  ;;  %v169_v8 = vmul.f32 %v998_v25, %v113_v57  ;;  %v181_v15 = vmul.f32 %v994_v23, %v113_v57 }
  0x82   :  { %v93_v20 = vpop.permute.xlu1 %92 }
  0x83   :  { %v85_v21 = vpop.permute.xlu0 %84  ;;  %v144_v30 = vmul.f32 %v994_v23, %v93_v20  ;;  %v137_v40 = vmul.f32 %v996_v24, %v93_v20  ;;  %v129_v43 = vmul.f32 %v998_v25, %v93_v20 }
  0x84   :  { %v124_v35 = vmul.f32 %v994_v23, %v85_v21 }
  0x8b   :  { %v97_v32 = vpop.permute.xlu1 %96 }
  0x8c   :  { %v89_v33 = vpop.permute.xlu0 %88  ;;  %v145_v36 = vmul.f32 %v996_v24, %v97_v32  ;;  %v151_v37 = vmul.f32 %v994_v23, %v97_v32  ;;  %v139_v50 = vmul.f32 %v998_v25, %v97_v32 }
  0x8d   :  { %v126_v38 = vmul.f32 %v996_v24, %v89_v33  ;;  %v136_v41 = vmul.f32 %v994_v23, %v89_v33 }
  0x8e   :  { %v146_v44 = vadd.f32 %v145_v36, %v144_v30  ;;  %v153_v45 = vadd.f32 %v152_v29, %v151_v37  ;;  %v215_v30 = vld [vmem:[#allocation2 + $0x28] sm:$0xff] }
  0x8f   :  { %v127_v46 = vadd.f32 %v126_v38, %v124_v35  ;;  %v138_v51 = vadd.f32 %v137_v40, %v136_v41  ;;  %v214_v35 = vld [vmem:[#allocation2 + $0x20] sm:$0xff]  ;;  %v212_v41 = vld [vmem:[#allocation2 + $0x10] sm:$0xff] }
  0x90   :  { %v148_v53 = vadd.f32 %v147_v39, %v146_v44  ;;  %v155_v54 = vadd.f32 %v154_v31, %v153_v45  ;;  %v213_v39 = vld [vmem:[#allocation2 + $0x18] sm:$0xff]  ;;  %v211_v44 = vld [vmem:[#allocation2 + $0x8] sm:$0xff]  ;;  %v210_v45 = vld [vmem:[#allocation2] sm:$0xff] }
  0x91   :  { %v130_v55 = vadd.f32 %v129_v43, %v127_v46  ;;  %v140_v56 = vadd.f32 %v139_v50, %v138_v51  ;;  %v437_v50 = vld [vmem:[#allocation4 + $0x3f0] sm:$0xff]  ;;  %v438_v51 = vld [vmem:[#allocation4 + $0x3f8] sm:$0xff] }
  0x92   :  { %v149_v59 = vadd.f32 %v1014_v47, %v148_v53  ;;  %v156_v60 = vadd.f32 %v1014_v47, %v155_v54  ;;  %v432_v53 = vld [vmem:[#allocation4 + $0x3c8] sm:$0xff]  ;;  %479 = vmatpush.msrb.mxu1 %v437_v50  ;;  %v433_v54 = vld [vmem:[#allocation4 + $0x3d0] sm:$0xff]  ;;  %v375_v50 = vld [vmem:[#allocation4 + $0x200] sm:$0xff] }
  0x93   :  { %v134_v61 = vadd.f32 %v1014_v47, %v130_v55  ;;  %v141_v0 = vadd.f32 %v1014_v47, %v140_v56  ;;  %v434_v55 = vld [vmem:[#allocation4 + $0x3d8] sm:$0xff]  ;;  %460 = vmatpush.msra.mxu3 %v432_v53 }
  0x94   :  { %v109_v3 = vpop.permute.xlu1 %108  ;;  %v150_v5 = vmax.f32 %v149_v59, 0.0  ;;  %v157_v6 = vmax.f32 %v156_v60, 0.0  ;;  %480 = vmatpush.msrb.mxu1 %v433_v54  ;;  %v378_v53 = vld [vmem:[#allocation4 + $0x218] sm:$0xff]  ;;  %v371_v54 = vld [vmem:[#allocation4 + $0x1e0] sm:$0xff] }
  0x95   :  { %v117_v4 = vpop.permute.xlu0 %116  ;;  %v135_v7 = vmax.f32 %v134_v61, 0.0  ;;  %v162_v9 = vmul.f32 %v998_v25, %v109_v3  ;;  %v167_v10 = vmul.f32 %v996_v24, %v109_v3  ;;  %v174_v11 = vmul.f32 %v994_v23, %v109_v3  ;;  %v216_v23 = vld [vmem:[#allocation2 + $0x30] sm:$0xff]  ;;  %v424_v3 = vld [vmem:[#allocation4 + $0x388] sm:$0xff] }
  0x96   :  { %v1029_v12 = vmax.f32 %v150_v5, %v157_v6  ;;  %v142_v13 = vmax.f32 %v141_v0, 0.0  ;;  %v177_v18 = vmul.f32 %v998_v25, %v117_v4  ;;  %v182_v20 = vmul.f32 %v996_v24, %v117_v4  ;;  %256 = vmatpush.msra.mxu0 %v216_v23  ;;  %v429_v0 = vld [vmem:[#allocation4 + $0x3b0] sm:$0xff]  ;;  %v426_v5 = vld [vmem:[#allocation4 + $0x398] sm:$0xff]  ;;  %v419_v6 = vld [vmem:[#allocation4 + $0x360] sm:$0xff] }
  0x97   :  { %v163_v16 = vadd.f32 %v162_v9, %v161_v62  ;;  %v168_v17 = vadd.f32 %v167_v10, %v166_v63  ;;  %v176_v19 = vadd.f32 %v175_v2, %v174_v11  ;;  %v427_v62 = vld [vmem:[#allocation4 + $0x3a0] sm:$0xff]  ;;  %v428_v63 = vld [vmem:[#allocation4 + $0x3a8] sm:$0xff]  ;;  %481 = vmatpush.msrb.mxu1 %v429_v0  ;;  %v425_v4 = vld [vmem:[#allocation4 + $0x390] sm:$0xff] }
  0x98   :  { %195 = vrot.lane.b32.xlu1 %v1029_v12, %s927_s2  ;;  %793 = vmatmul.msk.f32.vlgmr.msra.gmra.mxu1 %vm205_vm0, %v1029_v12  ;;  %v143_v21 = vmax.f32 %v135_v7, %v142_v13  ;;  %v183_v29 = vadd.f32 %v182_v20, %v181_v15  ;;  %v423_v2 = vld [vmem:[#allocation4 + $0x380] sm:$0xff]  ;;  %v420_v7 = vld [vmem:[#allocation4 + $0x368] sm:$0xff]  ;;  %v422_v9 = vld [vmem:[#allocation4 + $0x378] sm:$0xff] }
  0x99   :  { %v170_v26 = vadd.f32 %v169_v8, %v168_v17  ;;  %v164_v27 = vadd.f32 %v1014_v47, %v163_v16  ;;  %v178_v24 = vadd.f32 %v177_v18, %v176_v19  ;;  %257 = vmatpush.msra.mxu0 %v215_v30  ;;  %441 = vmatpush.msra.mxu2 %v427_v62  ;;  %v421_v8 = vld [vmem:[#allocation4 + $0x370] sm:$0xff]  ;;  %v415_v10 = vld [vmem:[#allocation4 + $0x340] sm:$0xff]  ;;  %v416_v11 = vld [vmem:[#allocation4 + $0x348] sm:$0xff] }
  0x9a   :  { %193 = vrot.lane.b32.xlu2 %v143_v21, %s927_s2  ;;  %461 = vmatpush.msra.mxu3 %v428_v63  ;;  %v418_v13 = vld [vmem:[#allocation4 + $0x358] sm:$0xff]  ;;  %v412_v15 = vld [vmem:[#allocation4 + $0x328] sm:$0xff]  ;;  %v413_v16 = vld [vmem:[#allocation4 + $0x330] sm:$0xff] }
  0x9b   :  { %v171_v28 = vadd.f32 %v1014_v47, %v170_v26  ;;  %v165_v32 = vmax.f32 %v164_v27, 0.0  ;;  %v179_v37 = vadd.f32 %v1014_v47, %v178_v24  ;;  %258 = vmatpush.msra.mxu0 %v214_v35  ;;  %442 = vmatpush.msra.mxu2 %v423_v2  ;;  %v414_v17 = vld [vmem:[#allocation4 + $0x338] sm:$0xff]  ;;  %v407_v18 = vld [vmem:[#allocation4 + $0x300] sm:$0xff]  ;;  %v408_v19 = vld [vmem:[#allocation4 + $0x308] sm:$0xff] }
  0x9c   :  { %462 = vmatpush.msra.mxu3 %v424_v3  ;;  %482 = vmatpush.msrb.mxu1 %v425_v4  ;;  %v409_v20 = vld [vmem:[#allocation4 + $0x310] sm:$0xff]  ;;  %v404_v26 = vld [vmem:[#allocation4 + $0x2e8] sm:$0xff]  ;;  %v406_v23 = vld [vmem:[#allocation4 + $0x2f8] sm:$0xff] }
  0x9d   :  { %v121_v31 = vpop.permute.xlu1 %120  ;;  %v172_v33 = vmax.f32 %v171_v28, 0.0  ;;  %259 = vmatpush.msra.mxu0 %v213_v39  ;;  %v180_v43 = vmax.f32 %v179_v37, 0.0  ;;  %443 = vmatpush.msra.mxu2 %v419_v6  ;;  %v405_v27 = vld [vmem:[#allocation4 + $0x2f0] sm:$0xff]  ;;  %v399_v28 = vld [vmem:[#allocation4 + $0x2c0] sm:$0xff]  ;;  %v400_v24 = vld [vmem:[#allocation4 + $0x2c8] sm:$0xff] }
  0x9e   :  { %v184_v34 = vmul.f32 %v998_v25, %v121_v31  ;;  %463 = vmatpush.msra.mxu3 %v420_v7  ;;  %483 = vmatpush.msrb.mxu1 %v421_v8  ;;  %v402_v30 = vld [vmem:[#allocation4 + $0x2d8] sm:$0xff]  ;;  %v395_v31 = vld [vmem:[#allocation4 + $0x2a0] sm:$0xff]  ;;  %v393_v37 = vld [vmem:[#allocation4 + $0x290] sm:$0xff] }
  0x9f   :  { %v173_v36 = vmax.f32 %v165_v32, %v172_v33  ;;  %260 = vmatpush.msra.mxu0 %v212_v41  ;;  %444 = vmatpush.msra.mxu2 %v415_v10  ;;  %v396_v32 = vld [vmem:[#allocation4 + $0x2a8] sm:$0xff]  ;;  %v397_v33 = vld [vmem:[#allocation4 + $0x2b0] sm:$0xff]  ;;  %v391_v35 = vld [vmem:[#allocation4 + $0x280] sm:$0xff] }
  0xa0   :  { %v185_v38 = vadd.f32 %v184_v34, %v183_v29  ;;  %464 = vmatpush.msra.mxu3 %v416_v11  ;;  %v401_v29 = vld [vmem:[#allocation4 + $0x2d0] sm:$0xff]  ;;  %v398_v34 = vld [vmem:[#allocation4 + $0x2b8] sm:$0xff]  ;;  %v387_v39 = vld [vmem:[#allocation4 + $0x260] sm:$0xff] }
  0xa1   :  { %794 = vmatmul.msk.f32.gmra.mxu1 %vm205_vm0, %v173_v36  ;;  %261 = vmatpush.msra.mxu0 %v211_v44  ;;  %v389_v41 = vld [vmem:[#allocation4 + $0x270] sm:$0xff]  ;;  %v384_v44 = vld [vmem:[#allocation4 + $0x248] sm:$0xff]  ;;  %v363_v62 = vld [vmem:[#allocation4 + $0x1a0] sm:$0xff] }
  0xa2   :  { %v186_v40 = vadd.f32 %v1014_v47, %v185_v38  ;;  %197 = vrot.lane.b32.xlu2 %v173_v36, %s927_s2  ;;  %v928_v47 = vmov 0.0   ;;  %445 = vmatpush.msra.mxu2 %v411_v14  ;;  %v394_v38 = vld [vmem:[#allocation4 + $0x298] sm:$0xff]  ;;  %v364_v63 = vld [vmem:[#allocation4 + $0x1a8] sm:$0xff]  ;;  %v365_v0 = vld [vmem:[#allocation4 + $0x1b0] sm:$0xff] }
  0xa3   :  { %262 = vmatpush.msra.mxu0 %v210_v45  ;;  %465 = vmatpush.msra.mxu3 %v412_v15  ;;  %v386_v45 = vld [vmem:[#allocation4 + $0x258] sm:$0xff]  ;;  %v359_v2 = vld [vmem:[#allocation4 + $0x180] sm:$0xff]  ;;  %v360_v3 = vld [vmem:[#allocation4 + $0x188] sm:$0xff] }
  0xa4   :  { %v187_v42 = vmax.f32 %v186_v40, 0.0  ;;  %446 = vmatpush.msra.mxu2 %v407_v18  ;;  %v388_v40 = vld [vmem:[#allocation4 + $0x268] sm:$0xff]  ;;  %v361_v4 = vld [vmem:[#allocation4 + $0x190] sm:$0xff]  ;;  %v355_v6 = vld [vmem:[#allocation4 + $0x160] sm:$0xff] }
  0xa5   :  { %499 = vmatpush.msrb.mxu0 %v438_v51  ;;  %466 = vmatpush.msra.mxu3 %v408_v19  ;;  %v376_v51 = vld [vmem:[#allocation4 + $0x208] sm:$0xff]  ;;  %v357_v8 = vld [vmem:[#allocation4 + $0x170] sm:$0xff]  ;;  %v351_v10 = vld [vmem:[#allocation4 + $0x140] sm:$0xff] }
  0xa6   :  { %v188_v25 = vmax.f32 %v180_v43, %v187_v42  ;;  %447 = vmatpush.msra.mxu2 %v403_v22  ;;  %v390_v42 = vld [vmem:[#allocation4 + $0x278] sm:$0xff]  ;;  %v383_v43 = vld [vmem:[#allocation4 + $0x240] sm:$0xff]  ;;  %v356_v7 = vld [vmem:[#allocation4 + $0x168] sm:$0xff] }
  0xa7   :  { %500 = vmatpush.msrb.mxu0 %v434_v55  ;;  %467 = vmatpush.msra.mxu3 %v404_v26  ;;  %v372_v55 = vld [vmem:[#allocation4 + $0x1e8] sm:$0xff]  ;;  %v347_v14 = vld [vmem:[#allocation4 + $0x120] sm:$0xff] }
  0xa8   :  { %199 = vrot.lane.b32.xlu0 %v188_v25, %s927_s2  ;;  %448 = vmatpush.msra.mxu2 %v399_v28  ;;  %v352_v11 = vld [vmem:[#allocation4 + $0x148] sm:$0xff]  ;;  %v343_v18 = vld [vmem:[#allocation4 + $0x100] sm:$0xff]  ;;  %v342_v28 = vld [vmem:[#allocation4 + $0xf8] sm:$0xff] }
  0xa9   :  { %795 = vmatmul.msk.f32.gmra.mxu1 %vm205_vm0, %v188_v25  ;;  %501 = vmatpush.msrb.mxu0 %v430_v1  ;;  %v385_v25 = vld [vmem:[#allocation4 + $0x250] sm:$0xff]  ;;  %v366_v1 = vld [vmem:[#allocation4 + $0x1b8] sm:$0xff]  ;;  %v348_v15 = vld [vmem:[#allocation4 + $0x128] sm:$0xff] }
  0xaa   :  { %468 = vmatpush.msra.mxu3 %v400_v24  ;;  %449 = vmatpush.msra.mxu2 %v395_v31  ;;  %v344_v19 = vld [vmem:[#allocation4 + $0x108] sm:$0xff]  ;;  %v339_v22 = vld [vmem:[#allocation4 + $0xe0] sm:$0xff]  ;;  %v338_v31 = vld [vmem:[#allocation4 + $0xd8] sm:$0xff] }
  0xab   :  { %502 = vmatpush.msrb.mxu0 %v426_v5  ;;  %v362_v5 = vld [vmem:[#allocation4 + $0x198] sm:$0xff]  ;;  %v340_v26 = vld [vmem:[#allocation4 + $0xe8] sm:$0xff]  ;;  %v335_v24 = vld [vmem:[#allocation4 + $0xc0] sm:$0xff] }
  0xac   :  { %469 = vmatpush.msra.mxu3 %v396_v32  ;;  %450 = vmatpush.msra.mxu2 %v391_v35  ;;  %v331_v32 = vld [vmem:[#allocation4 + $0xa0] sm:$0xff] }
  0xad   :  { %503 = vmatpush.msrb.mxu0 %v422_v9  ;;  %v358_v9 = vld [vmem:[#allocation4 + $0x178] sm:$0xff] }
  0xae   :  { %451 = vmatpush.msra.mxu2 %v387_v39  ;;  %v329_v39 = vld [vmem:[#allocation4 + $0x90] sm:$0xff] }
  0xaf   :  { %504 = vmatpush.msrb.mxu0 %v418_v13  ;;  %v354_v13 = vld [vmem:[#allocation4 + $0x158] sm:$0xff] }
  0xb0   :  { %452 = vmatpush.msra.mxu2 %v383_v43  ;;  %v325_v43 = vld [vmem:[#allocation4 + $0x70] sm:$0xff] }
  0xb1   :  { %301 = vmatmul.f32.gmra.mxu1 %v928_v47  ;;  %505 = vmatpush.msrb.mxu0 %v414_v17  ;;  %v380_v47 = vld [vmem:[#allocation4 + $0x228] sm:$0xff]  ;;  %v350_v17 = vld [vmem:[#allocation4 + $0x138] sm:$0xff] }
  0xf4   :  { %v194_v46 = vpop.permute.xlu2 %193 }
  0xf5   :  { %792 = vmatmul.msk.f32.vlgmr.msra.gmra.mxu0 %vm791_vm1, %v194_v46  ;;  %v379_v46 = vld [vmem:[#allocation4 + $0x220] sm:$0xff] }
  0xf6   :  { %453 = vmatpush.msra.mxu2 %v379_v46  ;;  %v321_v46 = vld [vmem:[#allocation4 + $0x50] sm:$0xff] }
  0xf8   :  { %454 = vmatpush.msra.mxu2 %v375_v50  ;;  %v316_v50 = vld [vmem:[#allocation4 + $0x28] sm:$0xff] }
  0xfa   :  { %519 = vmatpush.msrb.mxu2 %v371_v54  ;;  %v311_v54 = vld [vmem:[#allocation4] sm:$0xff] }
  0xfc   :  { %v198_v58 = vpop.permute.xlu2 %197 }
  0xfd   :  { %v208_v59 = vsel %vm205_vm0, %v1029_v12, %v198_v58  ;;  %v417_v12 = vld [vmem:[#allocation4 + $0x350] sm:$0xff]  ;;  %v367_v58 = vld [vmem:[#allocation4 + $0x1c0] sm:$0xff] }
  0xfe   :  { %484 = vmatpush.msrb.mxu1 %v417_v12  ;;  %520 = vmatpush.msrb.mxu2 %v367_v58  ;;  %v353_v12 = vld [vmem:[#allocation4 + $0x150] sm:$0xff] }
 0x100   :  { %485 = vmatpush.msrb.mxu1 %v413_v16  ;;  %521 = vmatpush.msrb.mxu2 %v363_v62  ;;  %v349_v16 = vld [vmem:[#allocation4 + $0x130] sm:$0xff] }
 0x102   :  { %486 = vmatpush.msrb.mxu1 %v409_v20  ;;  %522 = vmatpush.msrb.mxu2 %v359_v2  ;;  %v345_v20 = vld [vmem:[#allocation4 + $0x110] sm:$0xff] }
 0x104   :  { %487 = vmatpush.msrb.mxu1 %v405_v27  ;;  %523 = vmatpush.msrb.mxu2 %v355_v6  ;;  %v341_v27 = vld [vmem:[#allocation4 + $0xf0] sm:$0xff] }
 0x106   :  { %488 = vmatpush.msrb.mxu1 %v401_v29  ;;  %524 = vmatpush.msrb.mxu2 %v351_v10  ;;  %v336_v29 = vld [vmem:[#allocation4 + $0xc8] sm:$0xff]  ;;  %v680_v10 = vld [vmem:[#allocation6 + $0x1f8] sm:$0xff] }
 0x108   :  { %489 = vmatpush.msrb.mxu1 %v397_v33  ;;  %525 = vmatpush.msrb.mxu2 %v347_v14  ;;  %v332_v33 = vld [vmem:[#allocation4 + $0xa8] sm:$0xff]  ;;  %v663_v14 = vld [vmem:[#allocation6 + $0x170] sm:$0xff] }
 0x10a   :  { %v196_v56 = vpop.permute.xlu1 %195  ;;  %490 = vmatpush.msrb.mxu1 %v393_v37  ;;  %526 = vmatpush.msrb.mxu2 %v343_v18  ;;  %v327_v37 = vld [vmem:[#allocation4 + $0x80] sm:$0xff]  ;;  %v647_v18 = vld [vmem:[#allocation6 + $0xf0] sm:$0xff] }
 0x10b   :  { %v207_v57 = vsel %vm205_vm0, %v143_v21, %v196_v56  ;;  %v410_v21 = vld [vmem:[#allocation4 + $0x318] sm:$0xff]  ;;  %v373_v56 = vld [vmem:[#allocation4 + $0x1f0] sm:$0xff] }
 0x10c   :  { %266 = vmatmul.f32.gmra.mxu0 %v207_v57  ;;  %491 = vmatpush.msrb.mxu1 %v389_v41  ;;  %v374_v57 = vld [vmem:[#allocation4 + $0x1f8] sm:$0xff]  ;;  %v323_v41 = vld [vmem:[#allocation4 + $0x60] sm:$0xff] }
 0x10d   :  { %506 = vmatpush.msrb.mxu0 %v410_v21  ;;  %v346_v21 = vld [vmem:[#allocation4 + $0x118] sm:$0xff]  ;;  %527 = vmatpush.msrb.mxu2 %v339_v22  ;;  %v630_v22 = vld [vmem:[#allocation6 + $0x68] sm:$0xff] }
 0x10e   :  { %492 = vmatpush.msrb.mxu1 %v385_v25  ;;  %v319_v25 = vld [vmem:[#allocation4 + $0x40] sm:$0xff] }
 0x10f   :  { %507 = vmatpush.msrb.mxu0 %v406_v23  ;;  %528 = vmatpush.msrb.mxu2 %v335_v24  ;;  %v629_v24 = vld [vmem:[#allocation6 + $0x60] sm:$0xff] }
 0x110   :  { %493 = vmatpush.msrb.mxu1 %v381_v48 }
 0x111   :  { %508 = vmatpush.msrb.mxu0 %v402_v30  ;;  %v337_v30 = vld [vmem:[#allocation4 + $0xd0] sm:$0xff]  ;;  %529 = vmatpush.msrb.mxu2 %v331_v32  ;;  %v628_v32 = vld [vmem:[#allocation6 + $0x58] sm:$0xff] }
 0x112   :  { %494 = vmatpush.msrb.mxu1 %v377_v52  ;;  %v318_v52 = vld [vmem:[#allocation4 + $0x38] sm:$0xff] }
 0x113   :  { %509 = vmatpush.msrb.mxu0 %v398_v34  ;;  %v333_v34 = vld [vmem:[#allocation4 + $0xb0] sm:$0xff]  ;;  %530 = vmatpush.msrb.mxu2 %v327_v37  ;;  %v674_v37 = vld [vmem:[#allocation6 + $0x1c8] sm:$0xff] }
 0x114   :  { %269 = vmatmul.f32.gmra.mxu0 %v208_v59  ;;  %v368_v59 = vld [vmem:[#allocation4 + $0x1c8] sm:$0xff]  ;;  %559 = vmatpush.msra.mxu1 %v373_v56  ;;  %v313_v56 = vld [vmem:[#allocation4 + $0x10] sm:$0xff] }
 0x115   :  { %510 = vmatpush.msrb.mxu0 %v394_v38  ;;  %v1053_v23 = vpop.f32.mrf.mxu1  ;;  %v328_v38 = vld [vmem:[#allocation4 + $0x88] sm:$0xff]  ;;  %531 = vmatpush.msrb.mxu2 %v323_v41  ;;  %v643_v41 = vld [vmem:[#allocation6 + $0xd0] sm:$0xff] }
 0x117   :  { %511 = vmatpush.msrb.mxu0 %v390_v42  ;;  %v324_v42 = vld [vmem:[#allocation4 + $0x68] sm:$0xff]  ;;  %532 = vmatpush.msrb.mxu2 %v319_v25 }
 0x118   :  { %v642_v25 = vld [vmem:[#allocation6 + $0xc8] sm:$0xff] }
 0x119   :  { %512 = vmatpush.msrb.mxu0 %v386_v45  ;;  %v320_v45 = vld [vmem:[#allocation4 + $0x48] sm:$0xff] }
 0x11a   :  { %v200_v60 = vpop.permute.xlu0 %199 }
 0x11b   :  { %v209_v61 = vsel %vm205_vm0, %v173_v36, %v200_v60  ;;  %v392_v36 = vld [vmem:[#allocation4 + $0x288] sm:$0xff]  ;;  %513 = vmatpush.msrb.mxu0 %v382_v49  ;;  %v369_v60 = vld [vmem:[#allocation4 + $0x1d0] sm:$0xff]  ;;  %v315_v49 = vld [vmem:[#allocation4 + $0x20] sm:$0xff] }
 0x11c   :  { %272 = vmatmul.f32.gmra.mxu0 %v209_v61  ;;  %470 = vmatpush.msra.mxu3 %v392_v36  ;;  %v370_v61 = vld [vmem:[#allocation4 + $0x1d8] sm:$0xff] }
 0x11d   :  { %514 = vmatpush.msrb.mxu0 %v378_v53  ;;  %560 = vmatpush.msra.mxu1 %v369_v60  ;;  %v334_v36 = vld [vmem:[#allocation4 + $0xb8] sm:$0xff]  ;;  %v828_v60 = vld [vmem:[%s1072_s4] ss:$0 sm:$0xff] }
 0x11e   :  { %471 = vmatpush.msra.mxu3 %v388_v40  ;;  %v330_v40 = vld [vmem:[#allocation4 + $0x98] sm:$0xff]  ;;  %v296_v48 = vpop.f32.mrf.mxu1  ;;  %533 = vmatpush.msrb.mxu2 %v315_v49  ;;  %v654_v49 = vld [vmem:[#allocation6 + $0x128] sm:$0xff] }
 0x11f   :  { %579 = vmatpush.msra.mxu0 %v374_v57  ;;  %561 = vmatpush.msra.mxu1 %v365_v0  ;;  %v314_v57 = vld [vmem:[#allocation4 + $0x18] sm:$0xff] }
 0x120   :  { %472 = vmatpush.msra.mxu3 %v384_v44  ;;  %v326_v44 = vld [vmem:[#allocation4 + $0x78] sm:$0xff]  ;;  %534 = vmatpush.msrb.mxu2 %v311_v54  ;;  %v669_v54 = vld [vmem:[#allocation6 + $0x1a0] sm:$0xff] }
 0x121   :  { %580 = vmatpush.msra.mxu0 %v370_v61  ;;  %562 = vmatpush.msra.mxu1 %v361_v4 }
 0x122   :  { %473 = vmatpush.msra.mxu3 %v380_v47  ;;  %v322_v47 = vld [vmem:[#allocation4 + $0x58] sm:$0xff] }
 0x123   :  { %581 = vmatpush.msra.mxu0 %v366_v1  ;;  %563 = vmatpush.msra.mxu1 %v357_v8 }
 0x124   :  { %474 = vmatpush.msra.mxu3 %v376_v51  ;;  %v317_v51 = vld [vmem:[#allocation4 + $0x30] sm:$0xff] }
 0x125   :  { %582 = vmatpush.msra.mxu0 %v362_v5  ;;  %564 = vmatpush.msra.mxu1 %v353_v12  ;;  %v632_v12 = vld [vmem:[#allocation6 + $0x78] sm:$0xff] }
 0x126   :  { %539 = vmatpush.msrb.mxu3 %v372_v55  ;;  %v312_v55 = vld [vmem:[#allocation4 + $0x8] sm:$0xff]  ;;  %v299_v58 = vpop.f32.mrf.mxu1 }
 0x127   :  { %583 = vmatpush.msra.mxu0 %v358_v9  ;;  %565 = vmatpush.msra.mxu1 %v349_v16  ;;  %v664_v9 = vld [vmem:[#allocation6 + $0x178] sm:$0xff] }
 0x128   :  { %540 = vmatpush.msrb.mxu3 %v368_v59 }
 0x129   :  { %584 = vmatpush.msra.mxu0 %v354_v13  ;;  %566 = vmatpush.msra.mxu1 %v345_v20  ;;  %v648_v13 = vld [vmem:[#allocation6 + $0xf8] sm:$0xff]  ;;  %v678_v20 = vld [vmem:[#allocation6 + $0x1e8] sm:$0xff] }
 0x12a   :  { %541 = vmatpush.msrb.mxu3 %v364_v63 }
 0x12b   :  { %585 = vmatpush.msra.mxu0 %v350_v17  ;;  %567 = vmatpush.msra.mxu1 %v341_v27  ;;  %v631_v17 = vld [vmem:[#allocation6 + $0x70] sm:$0xff] }
 0x12c   :  { %542 = vmatpush.msrb.mxu3 %v360_v3 }
 0x12d   :  { %586 = vmatpush.msra.mxu0 %v346_v21  ;;  %568 = vmatpush.msra.mxu1 %v337_v30  ;;  %v660_v30 = vld [vmem:[#allocation6 + $0x158] sm:$0xff] }
 0x12e   :  { %543 = vmatpush.msrb.mxu3 %v356_v7  ;;  %v302_v63 = vpop.f32.mrf.mxu1 }
 0x12f   :  { %587 = vmatpush.msra.mxu0 %v342_v28  ;;  %569 = vmatpush.msra.mxu1 %v333_v34  ;;  %v677_v28 = vld [vmem:[#allocation6 + $0x1e0] sm:$0xff]  ;;  %v659_v34 = vld [vmem:[#allocation6 + $0x150] sm:$0xff] }
 0x130   :  { %544 = vmatpush.msrb.mxu3 %v352_v11 }
 0x131   :  { %588 = vmatpush.msra.mxu0 %v338_v31  ;;  %570 = vmatpush.msra.mxu1 %v329_v39  ;;  %v676_v31 = vld [vmem:[#allocation6 + $0x1d8] sm:$0xff]  ;;  %v673_v39 = vld [vmem:[#allocation6 + $0x1c0] sm:$0xff] }
 0x132   :  { %545 = vmatpush.msrb.mxu3 %v348_v15  ;;  %v679_v15 = vld [vmem:[#allocation6 + $0x1f0] sm:$0xff] }
 0x133   :  { %589 = vmatpush.msra.mxu0 %v334_v36  ;;  %571 = vmatpush.msra.mxu1 %v325_v43  ;;  %v658_v36 = vld [vmem:[#allocation6 + $0x148] sm:$0xff]  ;;  %v672_v43 = vld [vmem:[#allocation6 + $0x1b8] sm:$0xff] }
 0x134   :  { %546 = vmatpush.msrb.mxu3 %v344_v19  ;;  %v662_v19 = vld [vmem:[#allocation6 + $0x168] sm:$0xff] }
 0x135   :  { %590 = vmatpush.msra.mxu0 %v330_v40  ;;  %572 = vmatpush.msra.mxu1 %v321_v46  ;;  %v627_v40 = vld [vmem:[#allocation6 + $0x50] sm:$0xff] }
 0x136   :  { %547 = vmatpush.msrb.mxu3 %v340_v26  ;;  %v646_v26 = vld [vmem:[#allocation6 + $0xe8] sm:$0xff]  ;;  %v671_v46 = vld [vmem:[#allocation6 + $0x1b0] sm:$0xff] }
 0x137   :  { %591 = vmatpush.msra.mxu0 %v326_v44  ;;  %573 = vmatpush.msra.mxu1 %v317_v51  ;;  %v626_v44 = vld [vmem:[#allocation6 + $0x48] sm:$0xff]  ;;  %v624_v51 = vld [vmem:[#allocation6 + $0x38] sm:$0xff] }
 0x138   :  { %548 = vmatpush.msrb.mxu3 %v336_v29  ;;  %v645_v29 = vld [vmem:[#allocation6 + $0xe0] sm:$0xff] }
 0x139   :  { %592 = vmatpush.msra.mxu0 %v322_v47  ;;  %574 = vmatpush.msra.mxu1 %v313_v56  ;;  %v625_v47 = vld [vmem:[#allocation6 + $0x40] sm:$0xff]  ;;  %v639_v56 = vld [vmem:[#allocation6 + $0xb0] sm:$0xff] }
 0x13a   :  { %549 = vmatpush.msrb.mxu3 %v332_v33  ;;  %v644_v33 = vld [vmem:[#allocation6 + $0xd8] sm:$0xff] }
 0x13b   :  { %593 = vmatpush.msra.mxu0 %v318_v52  ;;  %v640_v52 = vld [vmem:[#allocation6 + $0xb8] sm:$0xff] }
 0x13c   :  { %550 = vmatpush.msrb.mxu3 %v328_v38  ;;  %v657_v38 = vld [vmem:[#allocation6 + $0x140] sm:$0xff] }
 0x13d   :  { %594 = vmatpush.msra.mxu0 %v314_v57  ;;  %v652_v57 = vld [vmem:[#allocation6 + $0x118] sm:$0xff] }
 0x13e   :  { %551 = vmatpush.msrb.mxu3 %v324_v42  ;;  %v656_v42 = vld [vmem:[#allocation6 + $0x138] sm:$0xff] }
 0x140   :  { %552 = vmatpush.msrb.mxu3 %v320_v45  ;;  %v655_v45 = vld [vmem:[#allocation6 + $0x130] sm:$0xff] }
 0x142   :  { %553 = vmatpush.msrb.mxu3 %v316_v50  ;;  %v670_v50 = vld [vmem:[#allocation6 + $0x1a8] sm:$0xff] }
 0x144   :  { %554 = vmatpush.msrb.mxu3 %v312_v55  ;;  %v623_v55 = vld [vmem:[#allocation6 + $0x30] sm:$0xff] }
 0x172   :  { %v264_v35 = vpop.f32.mrf.mxu0 }
 0x173   :  { %v265_v4 = vadd.f32 %v828_v60, %v264_v35  ;;  %v675_v35 = vld [vmem:[#allocation6 + $0x1d0] sm:$0xff] }
 0x175   :  { %v294_v11 = vadd.f32 %v1053_v23, %v265_v4  ;;  %v661_v23 = vld [vmem:[#allocation6 + $0x160] sm:$0xff]  ;;  %v636_v4 = vld [vmem:[#allocation6 + $0x98] sm:$0xff] }
 0x177   :  { %v305_v21 = vmax.f32 %v294_v11, 0.0  ;;  %v617_v11 = vld [vmem:[#allocation6] sm:$0xff] }
 0x189   :  { %v267_v53 = vpop.f32.mrf.mxu0 }
 0x18a   :  { %v268_v2 = vadd.f32 %v828_v60, %v267_v53  ;;  %v653_v53 = vld [vmem:[#allocation6 + $0x120] sm:$0xff] }
 0x18c   :  { %v297_v7 = vadd.f32 %v296_v48, %v268_v2  ;;  %v641_v48 = vld [vmem:[#allocation6 + $0xc0] sm:$0xff]  ;;  %v666_v2 = vld [vmem:[#allocation6 + $0x188] sm:$0xff] }
 0x18e   :  { %v306_v16 = vmax.f32 %v297_v7, 0.0  ;;  %v619_v7 = vld [vmem:[#allocation6 + $0x10] sm:$0xff] }
 0x190   :  { %v309_v27 = vmax.f32 %v305_v21, %v306_v16 }
 0x191   :  { %v270_v59 = vpop.f32.mrf.mxu0 }
 0x192   :  { %v271_v61 = vadd.f32 %v828_v60, %v270_v59  ;;  %v622_v59 = vld [vmem:[#allocation6 + $0x28] sm:$0xff] }
 0x194   :  { %v300_v0 = vadd.f32 %v299_v58, %v271_v61  ;;  %v668_v58 = vld [vmem:[#allocation6 + $0x198] sm:$0xff]  ;;  %v651_v61 = vld [vmem:[#allocation6 + $0x110] sm:$0xff] }
 0x196   :  { %v307_v5 = vmax.f32 %v300_v0, 0.0  ;;  %v637_v0 = vld [vmem:[#allocation6 + $0xa0] sm:$0xff] }
 0x199   :  { %v273_v62 = vpop.f32.mrf.mxu0 }
 0x19a   :  { %v274_v1 = vadd.f32 %v828_v60, %v273_v62  ;;  %v638_v60 = vld [vmem:[#allocation6 + $0xa8] sm:$0xff]  ;;  %v667_v62 = vld [vmem:[#allocation6 + $0x190] sm:$0xff] }
 0x19c   :  { %v303_v3 = vadd.f32 %v302_v63, %v274_v1  ;;  %v621_v63 = vld [vmem:[#allocation6 + $0x20] sm:$0xff]  ;;  %v650_v1 = vld [vmem:[#allocation6 + $0x108] sm:$0xff] }
 0x19e   :  { %v308_v6 = vmax.f32 %v303_v3, 0.0  ;;  %v620_v3 = vld [vmem:[#allocation6 + $0x18] sm:$0xff] }
 0x1a0   :  { %v310_v8 = vmax.f32 %v307_v5, %v308_v6  ;;  %v649_v5 = vld [vmem:[#allocation6 + $0x100] sm:$0xff] }
 0x1a1   :  { %v665_v6 = vld [vmem:[#allocation6 + $0x180] sm:$0xff] }
 0x1a2   :  { %455 = vmatmul.f32.vlgmr.msra.gmra.mxu2 %v310_v8  ;;  %475 = vmatmul.f32.vlgmr.msra.gmra.mxu3 %v310_v8 }
 0x1a3   :  { %495 = vmatmul.f32.vlgmr.msrb.gmra.mxu1 %v310_v8  ;;  %515 = vmatmul.f32.vlgmr.msrb.gmra.mxu0 %v310_v8  ;;  %v635_v8 = vld [vmem:[#allocation6 + $0x90] sm:$0xff] }
 0x1a4   :  { %725 = vmatpush.msrb.mxu1 %v664_v9  ;;  %745 = vmatpush.msrb.mxu0 %v680_v10  ;;  %v618_v9 = vld [vmem:[#allocation6 + $0x8] sm:$0xff] }
 0x1a5   :  { %685 = vmatpush.msra.mxu2 %v632_v12  ;;  %705 = vmatpush.msra.mxu3 %v648_v13  ;;  %v634_v10 = vld [vmem:[#allocation6 + $0x88] sm:$0xff]  ;;  %v633_v12 = vld [vmem:[#allocation6 + $0x80] sm:$0xff] }
 0x1a6   :  { %726 = vmatpush.msrb.mxu1 %v663_v14  ;;  %746 = vmatpush.msrb.mxu0 %v679_v15  ;;  %v599_v15 = vld [vmem:[%s1074_s6] sm:$0xf] }
 0x1a7   :  { %686 = vmatpush.msra.mxu2 %v631_v17  ;;  %706 = vmatpush.msra.mxu3 %v647_v18  ;;  %v603_v18 = vperm.slane %v599_v15, 2 }
 0x1a8   :  { %727 = vmatpush.msrb.mxu1 %v662_v19  ;;  %747 = vmatpush.msrb.mxu0 %v678_v20  ;;  %v604_v19 = vperm.slane %v599_v15, 3 }
 0x1a9   :  { %687 = vmatpush.msra.mxu2 %v630_v22  ;;  %707 = vmatpush.msra.mxu3 %v646_v26 }
 0x1aa   :  { %535 = vmatmul.f32.vlgmr.msrb.gmra.mxu2 %v309_v27  ;;  %555 = vmatmul.f32.vlgmr.msrb.gmra.mxu3 %v309_v27 }
 0x1ab   :  { %575 = vmatmul.f32.vlgmr.msra.gmra.mxu1 %v309_v27  ;;  %595 = vmatmul.f32.vlgmr.msra.gmra.mxu0 %v309_v27 }
 0x1ac   :  { %728 = vmatpush.msrb.mxu1 %v661_v23  ;;  %748 = vmatpush.msrb.mxu0 %v677_v28  ;;  %v601_v28 = vperm.slane %v599_v15, 0 }
 0x1ad   :  { %688 = vmatpush.msra.mxu2 %v629_v24  ;;  %708 = vmatpush.msra.mxu3 %v645_v29  ;;  %v602_v24 = vperm.slane %v599_v15, 1 }
 0x1ae   :  { %729 = vmatpush.msrb.mxu1 %v660_v30  ;;  %749 = vmatpush.msrb.mxu0 %v676_v31 }
 0x1af   :  { %689 = vmatpush.msra.mxu2 %v628_v32  ;;  %709 = vmatpush.msra.mxu3 %v644_v33 }
 0x1b0   :  { %730 = vmatpush.msrb.mxu1 %v659_v34  ;;  %750 = vmatpush.msrb.mxu0 %v675_v35 }
 0x1b1   :  { %690 = vmatpush.msra.mxu2 %v627_v40  ;;  %710 = vmatpush.msra.mxu3 %v643_v41 }
 0x1b2   :  { %731 = vmatpush.msrb.mxu1 %v658_v36  ;;  %751 = vmatpush.msrb.mxu0 %v674_v37 }
 0x1b3   :  { %691 = vmatpush.msra.mxu2 %v626_v44  ;;  %711 = vmatpush.msra.mxu3 %v642_v25 }
 0x1b4   :  { %732 = vmatpush.msrb.mxu1 %v657_v38  ;;  %752 = vmatpush.msrb.mxu0 %v673_v39  ;;  %v829_v39 = vld [vmem:[%s1076_s8] ss:$0 sm:$0xff] }
 0x1b5   :  { %692 = vmatpush.msra.mxu2 %v625_v47  ;;  %712 = vmatpush.msra.mxu3 %v641_v48 }
 0x1b6   :  { %733 = vmatpush.msrb.mxu1 %v656_v42  ;;  %753 = vmatpush.msrb.mxu0 %v672_v43 }
 0x1b7   :  { %693 = vmatpush.msra.mxu2 %v624_v51  ;;  %713 = vmatpush.msra.mxu3 %v640_v52 }
 0x1b8   :  { %734 = vmatpush.msrb.mxu1 %v655_v45  ;;  %754 = vmatpush.msrb.mxu0 %v671_v46 }
 0x1b9   :  { %694 = vmatpush.msra.mxu2 %v623_v55  ;;  %714 = vmatpush.msra.mxu3 %v639_v56 }
 0x1ba   :  { %735 = vmatpush.msrb.mxu1 %v654_v49  ;;  %755 = vmatpush.msrb.mxu0 %v670_v50 }
 0x1bb   :  { %695 = vmatpush.msra.mxu2 %v622_v59  ;;  %715 = vmatpush.msra.mxu3 %v638_v60 }
 0x1bc   :  { %736 = vmatpush.msrb.mxu1 %v653_v53  ;;  %756 = vmatpush.msrb.mxu0 %v669_v54 }
 0x1bd   :  { %696 = vmatpush.msra.mxu2 %v621_v63  ;;  %716 = vmatpush.msra.mxu3 %v637_v0 }
 0x1be   :  { %737 = vmatpush.msrb.mxu1 %v652_v57  ;;  %757 = vmatpush.msrb.mxu0 %v668_v58 }
 0x1bf   :  { %697 = vmatpush.msra.mxu2 %v620_v3  ;;  %717 = vmatpush.msra.mxu3 %v636_v4 }
 0x1c0   :  { %738 = vmatpush.msrb.mxu1 %v651_v61  ;;  %758 = vmatpush.msrb.mxu0 %v667_v62 }
 0x1c1   :  { %698 = vmatpush.msra.mxu2 %v619_v7  ;;  %718 = vmatpush.msra.mxu3 %v635_v8 }
 0x1c2   :  { %739 = vmatpush.msrb.mxu1 %v650_v1  ;;  %759 = vmatpush.msrb.mxu0 %v666_v2 }
 0x1c3   :  { %699 = vmatpush.msra.mxu2 %v618_v9  ;;  %719 = vmatpush.msra.mxu3 %v634_v10 }
 0x1c4   :  { %740 = vmatpush.msrb.mxu1 %v649_v5  ;;  %760 = vmatpush.msrb.mxu0 %v665_v6 }
 0x1c5   :  { %700 = vmatpush.msra.mxu2 %v617_v11  ;;  %720 = vmatpush.msra.mxu3 %v633_v12 }
 0x220   :  { %v496_v13 = vpop.f32.mrf.mxu1  ;;  %v516_v14 = vpop.f32.mrf.mxu0 }
 0x225   :  { %v456_v16 = vpop.f32.mrf.mxu2  ;;  %v476_v17 = vpop.f32.mrf.mxu3 }
 0x228   :  { %v576_v20 = vpop.f32.mrf.mxu1  ;;  %v596_v21 = vpop.f32.mrf.mxu0 }
 0x229   :  { %v577_v22 = vadd.f32 %v576_v20, %v496_v13  ;;  %v597_v26 = vadd.f32 %v596_v21, %v516_v14 }
 0x22b   :  { %v611_v27 = vadd.f32 %v603_v18, %v577_v22  ;;  %v612_v23 = vadd.f32 %v604_v19, %v597_v26 }
 0x22d   :  { %v615_v29 = vmax.f32 %v611_v27, 0.0  ;;  %v616_v30 = vmax.f32 %v612_v23, 0.0  ;;  %v536_v31 = vpop.f32.mrf.mxu2  ;;  %v556_v32 = vpop.f32.mrf.mxu3 }
 0x22e   :  { %v537_v33 = vadd.f32 %v536_v31, %v456_v16  ;;  %v557_v34 = vadd.f32 %v556_v32, %v476_v17 }
 0x22f   :  { %741 = vmatmul.f32.vlgmr.msrb.gmra.mxu1 %v615_v29  ;;  %761 = vmatmul.f32.vlgmr.msrb.gmra.mxu0 %v616_v30 }
 0x230   :  { %v609_v35 = vadd.f32 %v601_v28, %v537_v33  ;;  %v610_v36 = vadd.f32 %v602_v24, %v557_v34 }
 0x232   :  { %v613_v37 = vmax.f32 %v609_v35, 0.0  ;;  %v614_v38 = vmax.f32 %v610_v36, 0.0 }
 0x234   :  { %701 = vmatmul.f32.vlgmr.msra.gmra.mxu2 %v613_v37  ;;  %721 = vmatmul.f32.vlgmr.msra.gmra.mxu3 %v614_v38 }
 0x2ac   :  { %v742_v44 = vpop.f32.mrf.mxu1  ;;  %v762_v45 = vpop.f32.mrf.mxu0 }
 0x2b7   :  { %v702_v40 = vpop.f32.mrf.mxu2  ;;  %v722_v42 = vpop.f32.mrf.mxu3 }
 0x2b8   :  { %v703_v41 = vadd.f32 %v829_v39, %v702_v40 }
 0x2ba   :  { %v723_v43 = vadd.f32 %v722_v42, %v703_v41 }
 0x2bc   :  { %v743_v25 = vadd.f32 %v742_v44, %v723_v43 }
 0x2be   :  { %v763_v46 = vadd.f32 %v762_v45, %v743_v25 }
 0x2c0   :  { %v796_v47 = vmul.f32 -1.442695, %v763_v46 }
 0x2c2   :  { %830 = vpow2.f32 %v796_v47 }
 0x2c8   :  { %v831_v48 = vpop.eup %830 }
 0x2c9   :  { %v768_v49 = vadd.f32 1.0, %v831_v48 }
 0x2cb   :  { %832 = vrcp.f32 %v768_v49  ;;  %v780_v53 = vand.u32 2147483648, %v768_v49  ;;  %v778_v55 = vand.u32 2147483647, %v768_v49  ;;  %vm774_vm3 = vweird.f32 %v768_v49 }
 0x2cd   :  { %v781_v57 = vor.u32 1.1754944e-38, %v780_v53  ;;  %vm779_vm5 = vcmp.eq.f32.partialorder %v778_v55, 8.507059e+37 }
 0x2d1   :  { %v833_v50 = vpop.eup %832 }
 0x2d2   :  { %v770_v51 = vmul.f32 %v833_v50, %v768_v49  ;;  %vm775_vm2 = vweird.f32 %v833_v50 }
 0x2d3   :  { %vm776_vm4 = vmor %vm774_vm3, %vm775_vm2 }
 0x2d4   :  { %v771_v52 = vsub.f32 1.0, %v770_v51 }
 0x2d6   :  { %v772_v54 = vmul.f32 %v833_v50, %v771_v52 }
 0x2d8   :  { %v773_v56 = vadd.f32 %v833_v50, %v772_v54 }
 0x2da   :  { %v777_v58 = vsel %vm776_vm4, %v833_v50, %v773_v56 }
 0x2db   :  { %v782_v59 = vsel %vm779_vm5, %v781_v57, %v777_v58 }
 0x2dc   :  { %784 = vst [vmem:[%s1077_s9] sm:$0xff] %v782_v59 }
 0x2dd   :  { %789 = vsyncpa [#allocation3], 1 }
 0x2de   :  { %790 = vsyncpa [#allocation5], 1 }

</bundles_post_ra>
